<compile_context>
chip_gen: v7x
topology: tpu7x:2x2x1
jax: 0.10.0
libtpu: 0.0.40
codegen_flags: <defaults>
</compile_context>

<pallas_src>
import functools

import jax
import jax.numpy as jnp
from jax.experimental import pallas as pl
from jax.experimental.pallas import tpu as pltpu


def _round_up(x, m):
    return (x + m - 1) // m * m


def _patch_embed_kernel(x_ref, w_ref, b_ref, o_ref):
    # x_ref: (tm, K)  bf16 patch rows (streamed, double-buffered)
    # w_ref: (K, Ep)  bf16 flattened conv weight (resident across the grid)
    # b_ref: (1, Ep)  f32 bias (resident)
    # o_ref: (tm, Ep) output tile
    acc = jnp.dot(x_ref[...], w_ref[...], preferred_element_type=jnp.float32)
    o_ref[...] = (acc + b_ref[...]).astype(o_ref.dtype)


def prepare_patch_embed_params(weight, bias, *, compute_dtype=jnp.bfloat16):
    """One-time parameter prep (hoist out of the forward pass).

    weight: (E, C, p, p) Conv2d weight; bias: (E,).
    Returns wk: (K, Ep) compute_dtype, b2: (1, Ep) f32, with Ep = round_up(E, 128).
    """
    E, C, ph, pw = weight.shape
    K = C * ph * pw
    Ep = _round_up(E, 128)  # lane-dense output columns
    wk = weight.reshape(E, K).T.astype(compute_dtype)            # (K, E)
    wk = jnp.pad(wk, ((0, 0), (0, Ep - E)))                      # (K, Ep)
    b2 = jnp.pad(bias.astype(jnp.float32).reshape(1, E),
                 ((0, 0), (0, Ep - E)))                          # (1, Ep)
    return wk, b2


@functools.partial(
    jax.jit,
    static_argnames=("embed_dims", "patch_size", "tm_max", "compute_dtype"))
def patch_embed_forward(x, wk, b2, *, embed_dims, patch_size,
                        tm_max=512, compute_dtype=jnp.bfloat16):
    """x: (B, T, C, H, W); wk/b2 from prepare_patch_embed_params.

    Returns (B*T, num_patches, embed_dims), matching the PyTorch forward.
    """
    B, T, C, H, W = x.shape
    p = patch_size
    assert H % p == 0 and W % p == 0
    nh, nw = H // p, W // p
    num_patches = nh * nw
    M = B * T * num_patches
    K = C * p * p
    Ep = wk.shape[1]

    # --- patch extraction (stride==kernel Conv2d == row-per-patch GEMM) ------
    # Cast to bf16 first so XLA fuses the convert into the transpose and the
    # materialized patch matrix is half the bytes.
    xc = x.astype(compute_dtype)
    xp = xc.reshape(B * T, C, nh, p, nw, p)
    xp = xp.transpose(0, 2, 4, 1, 3, 5).reshape(M, K)   # (C, ph, pw) flatten order

    # Pad M so every grid step is a full (tm, K) tile (no ragged/partial blocks).
    tm = min(tm_max, _round_up(M, 8))
    Mp = _round_up(M, tm)
    if Mp != M:
        xp = jnp.pad(xp, ((0, Mp - M), (0, 0)))

    out_dtype = x.dtype
    grid = (Mp // tm,)

    out = pl.pallas_call(
        _patch_embed_kernel,
        out_shape=jax.ShapeDtypeStruct((Mp, Ep), out_dtype),
        grid=grid,
        in_specs=[
            pl.BlockSpec((tm, K), lambda i: (i, 0)),    # X: streamed over M
            pl.BlockSpec((K, Ep), lambda i: (0, 0)),    # W: resident
            pl.BlockSpec((1, Ep), lambda i: (0, 0)),    # bias: resident
        ],
        out_specs=pl.BlockSpec((tm, Ep), lambda i: (i, 0)),
        compiler_params=pltpu.CompilerParams(
            # parallel M axis -> shard patch rows across both TCs on v7x.
            dimension_semantics=("parallel",),
        ),
        cost_estimate=pl.CostEstimate(
            flops=2 * Mp * K * Ep,
            bytes_accessed=(Mp * K + K * Ep) * jnp.dtype(compute_dtype).itemsize
                           + Mp * Ep * jnp.dtype(out_dtype).itemsize,
            transcendentals=0,
        ),
    )(xp, wk, b2)

    # Drop the M / E padding and restore (B*T, num_patches, E).
    out = out[:M, :embed_dims]
    return out.reshape(B * T, num_patches, embed_dims)


if __name__ == "__main__":
    # Small, module-consistent shapes.
    B, T = 2, 2
    C = 3            # in_channels
    H = W = 16       # img_size
    P = 8            # patch_size
    E = 32           # embed_dims
    # num_patches = (16//8) * (16//8) = 4

    key = jax.random.PRNGKey(0)
    kx, kw = jax.random.split(key)

    x = jax.random.normal(kx, (B, T, C, H, W), dtype=jnp.float32)

    # Deterministic parameter init mirroring kaiming_init_(mode='fan_in',
    # nonlinearity='relu'): std = sqrt(2 / fan_in), fan_in = C*P*P; bias = 0.
    fan_in = C * P * P
    std = (2.0 / fan_in) ** 0.5
    weight = std * jax.random.normal(kw, (E, C, P, P), dtype=jnp.float32)
    bias = jnp.zeros((E,), dtype=jnp.float32)

    # One-time param prep (flatten/transpose/pad/cast) outside the forward.
    wk, b2 = prepare_patch_embed_params(weight, bias)

    out = patch_embed_forward(x, wk, b2, embed_dims=E, patch_size=P)
    out = jax.block_until_ready(out)
    assert out.shape == (B * T, (H // P) * (W // P), E), out.shape

    # Reference: plain-JAX f32 conv-as-GEMM (same semantics as the PyTorch Conv2d
    # path).  The kernel uses bf16 inputs with f32 accumulation, so compare with
    # a relaxed tolerance.
    xp_ref = x.reshape(B * T, C, H // P, P, W // P, P).transpose(0, 2, 4, 1, 3, 5)
    xp_ref = xp_ref.reshape(-1, C * P * P)
    ref = (xp_ref @ weight.reshape(E, -1).T + bias).reshape(out.shape)
    assert jnp.allclose(out, ref, atol=2e-2, rtol=2e-2), float(
        jnp.max(jnp.abs(out - ref)))

    print("KERNEL_OK")
</pallas_src>

<mosaic_0001>
module attributes {stable_mosaic.version = 11 : i64} {
  func.func @_patch_embed_kernel(%arg0: i32, %arg1: memref<16x192xbf16, #tpu.memory_space<vmem>>, %arg2: memref<192x128xbf16, #tpu.memory_space<vmem>>, %arg3: memref<1x128xf32, #tpu.memory_space<vmem>>, %arg4: memref<16x128xf32, #tpu.memory_space<vmem>>) attributes {dimension_semantics = [#tpu.dimension_semantics<parallel>], iteration_bounds = array<i64: 1>, scalar_prefetch = 0 : i64, scratch_operands = 0 : i64, tpu.core_type = #tpu.core_type<tc>, window_params = [{transform_indices = @transform_0, window_bounds = array<i64: 16, 192>}, {pipeline_mode = #tpu.pipeline_mode<synchronous>, transform_indices = @transform_1, window_bounds = array<i64: 192, 128>}, {pipeline_mode = #tpu.pipeline_mode<synchronous>, transform_indices = @transform_2, window_bounds = array<i64: 1, 128>}, {transform_indices = @transform_3, window_bounds = array<i64: 16, 128>}]} {
    %c0 = arith.constant 0 : index
    %c0_0 = arith.constant 0 : index
    %0 = vector.load %arg1[%c0, %c0_0] : memref<16x192xbf16, #tpu.memory_space<vmem>>, vector<16x192xbf16>
    %c0_1 = arith.constant 0 : index
    %c0_2 = arith.constant 0 : index
    %1 = vector.load %arg2[%c0_1, %c0_2] : memref<192x128xbf16, #tpu.memory_space<vmem>>, vector<192x128xbf16>
    %cst = arith.constant dense<0.000000e+00> : vector<16x128xf32>
    %2 = tpu.matmul %0, %1, %cst {dimension_numbers = #tpu.dot_dimension_numbers<[1], [0], [0], [1], [0, 0, 1, 1], [], []>} : vector<16x192xbf16>, vector<192x128xbf16>, vector<16x128xf32> -> vector<16x128xf32>
    %c0_3 = arith.constant 0 : index
    %c0_4 = arith.constant 0 : index
    %3 = vector.load %arg3[%c0_3, %c0_4] : memref<1x128xf32, #tpu.memory_space<vmem>>, vector<1x128xf32>
    %4 = vector.broadcast %3 : vector<1x128xf32> to vector<16x128xf32>
    %5 = arith.addf %2, %4 : vector<16x128xf32>
    %c0_5 = arith.constant 0 : index
    %c0_6 = arith.constant 0 : index
    %6 = vector.load %arg4[%c0_5, %c0_6] : memref<16x128xf32, #tpu.memory_space<vmem>>, vector<16x128xf32>
    tpu.vector_store %arg4[%c0_5, %c0_6], %5 {strides = array<i32>} : memref<16x128xf32, #tpu.memory_space<vmem>>, vector<16x128xf32>,
    return
  }
  func.func @transform_0(%arg0: i32) -> (i32, i32) {
    %c0_i32 = arith.constant 0 : i32
    %c0_i32_0 = arith.constant 0 : i32
    return %arg0, %c0_i32 : i32, i32
  }
  func.func @transform_1(%arg0: i32) -> (i32, i32) {
    %c0_i32 = arith.constant 0 : i32
    %c0_i32_0 = arith.constant 0 : i32
    %c0_i32_1 = arith.constant 0 : i32
    return %c0_i32, %c0_i32_0 : i32, i32
  }
  func.func @transform_2(%arg0: i32) -> (i32, i32) {
    %c0_i32 = arith.constant 0 : i32
    %c0_i32_0 = arith.constant 0 : i32
    %c0_i32_1 = arith.constant 0 : i32
    return %c0_i32, %c0_i32_0 : i32, i32
  }
  func.func @transform_3(%arg0: i32) -> (i32, i32) {
    %c0_i32 = arith.constant 0 : i32
    %c0_i32_0 = arith.constant 0 : i32
    return %arg0, %c0_i32 : i32, i32
  }
}

</mosaic_0001>

<bundles_post_ra>
// kernel: patch_embed_forward.1
= control target key start
LH: loop header
LB: loop body
LE: loop exit
PB: predicated region body
PF: predicated region fallthrough
CT: control target
= control target key end

     0   :  { %v252_v1 = vmov 0   ;;  %vm130_vm0 = vcmask 523264   ;;  %s333_s0 = inlined_call_operand.vmem [shape: bf16[16,192], index: 0, kind: input, shape index: {}]   ;;  %s334_s1 = inlined_call_operand.vmem [shape: bf16[192,128], index: 1, kind: input, shape index: {}]   ;;  %s335_s2 = inlined_call_operand.vmem [shape: f32[1,128], index: 2, kind: input, shape index: {}]   ;;  %s336_s3 = inlined_call_operand.hbm [shape: f32[16,128], index: 3, kind: output, shape index: {}]  }
   0x1   :  { %v213_v0 = vld [vmem:[%s334_s1] sm:$0xff]   ;;  %134 = vmatprep.subr.bf16.mxu0 %v252_v1  ;;  %v214_v2 = vld [vmem:[%s334_s1 + $0x8] sm:$0xff]   ;;  %v215_v3 = vld [vmem:[%s334_s1 + $0x10] sm:$0xff]  }
   0x2   :  { %135 = vmatpush1.bf16.msra.mxu0 %v213_v0  ;;  %v216_v4 = vld [vmem:[%s334_s1 + $0x18] sm:$0xff]   ;;  %v227_v5 = vld [vmem:[%s333_s0 + $0x4] ss:$8 sps:$4 sm:$0xff]  }
   0x3   :  { %136 = vmatprep.subr.bf16.mxu0 %v252_v1 }
   0x6   :  { %137 = vmatpush1.bf16.msra.mxu0 %v214_v2 }
   0x7   :  { %138 = vmatprep.subr.bf16.mxu0 %v252_v1 }
   0xa   :  { %139 = vmatpush1.bf16.msra.mxu0 %v215_v3 }
   0xb   :  { %140 = vmatprep.subr.bf16.mxu0 %v252_v1 }
   0xc   :  { %8 = vsyncpa [#allocation3], 0  ;;  %v217_v6 = vld [vmem:[%s334_s1 + $0x20] sm:$0xff]   ;;  %208 = vmatprep.mubr.msk.bf16.mxu0 %vm130_vm0, %v227_v5  ;;  %v218_v7 = vld [vmem:[%s334_s1 + $0x28] sm:$0xff]   ;;  %s253_s15 = smov [#allocation2]  }
   0xd   :  { %v219_v8 = vld [vmem:[%s334_s1 + $0x30] sm:$0xff]   ;;  %v220_v9 = vld [vmem:[%s334_s1 + $0x38] sm:$0xff]   ;;  %v221_v10 = vld [vmem:[%s334_s1 + $0x40] sm:$0xff]   ;;  %s182_s16 = sshll.u32 %s253_s15, 4  ;;  %s183_s16 = int_to_ptr.vmem [resolvable:$true] %s182_s16 }
   0xe   :  { %141 = vmatpush1.bf16.msra.mxu0 %v216_v4  ;;  %v222_v11 = vld [vmem:[%s334_s1 + $0x48] sm:$0xff]   ;;  %v223_v12 = vld [vmem:[%s334_s1 + $0x50] sm:$0xff]   ;;  %v224_v13 = vld [vmem:[%s334_s1 + $0x58] sm:$0xff]   ;;  %s228_s1 = scalar_lea.vmem %s183_s16, 256  ;;  %p233_p1 = scmp.lt.s32.totalorder %s183_s16, %s183_s16 }
   0xf   :  { %142 = vmatprep.subr.bf16.mxu0 %v252_v1  ;;  %v225_v14 = vld [vmem:[%s333_s0] ss:$8 sps:$4 sm:$0xff]   ;;  %p229_p0 = scmp.ne.s32.totalorder %s183_s16, %s228_s1  ;;  %p234_p2 = scmp.lt.s32.totalorder %s228_s1, %s228_s1 }
  0x10   :  { %v193_v15 = vld [vmem:[%s335_s2] ss:$0 sm:$0xff] }
  0x11   :  { %p235_p3 = por %p234_p2, %p233_p1 }
  0x12   :  { %143 = vmatpush1.bf16.msra.mxu0 %v217_v6 }
  0x13   :  { %144 = vmatprep.subr.bf16.mxu0 %v252_v1  ;;  %p236_p4 = pnand %p235_p3, %p229_p0 }
  0x16   :  { %145 = vmatpush1.bf16.msra.mxu0 %v218_v7 }
  0x17   :  { %146 = vmatprep.subr.bf16.mxu0 %v252_v1 }
  0x1a   :  { %147 = vmatpush1.bf16.msra.mxu0 %v219_v8 }
  0x1b   :  { %148 = vmatprep.subr.bf16.mxu0 %v252_v1 }
  0x1e   :  { %149 = vmatpush1.bf16.msra.mxu0 %v220_v9 }
  0x1f   :  { %150 = vmatprep.subr.bf16.mxu0 %v252_v1 }
  0x22   :  { %151 = vmatpush1.bf16.msra.mxu0 %v221_v10 }
  0x23   :  { %152 = vmatprep.subr.bf16.mxu0 %v252_v1 }
  0x26   :  { %153 = vmatpush1.bf16.msra.mxu0 %v222_v11 }
  0x27   :  { %154 = vmatprep.subr.bf16.mxu0 %v252_v1 }
  0x2a   :  { %155 = vmatpush1.bf16.msra.mxu0 %v223_v12 }
  0x2b   :  { %156 = vmatprep.subr.bf16.mxu0 %v252_v1 }
  0x2e   :  { %157 = vmatpush1.bf16.msra.mxu0 %v224_v13 }
  0x31   :  { %167 = vmatmul.mubr.bf16.vlgmr.msra.gmra.mrb[0].mxu0 %v225_v14 }
 0x104   :  { %v168_v16 = vpop.f32.mrb[0].mxu0 }
 0x105   :  { %v169_v17 = vadd.f32 %v193_v15, %v168_v16  ;;  %v170_v18 = vpop.f32.mrb[1].mxu0 }
 0x106   :  { %v171_v19 = vpop.f32.mrb[2].mxu0 }
 0x107   :  { %175 = vst [vmem:[#allocation2] sm:$0xff] %v169_v17  ;;  %v172_v20 = vadd.f32 %v193_v15, %v171_v19  ;;  %v173_v21 = vpop.f32.mrb[3].mxu0 }
 0x109   :  { %176 = vst [vmem:[#allocation2 + $0x8] sm:$0xff] %v172_v20 }
 0x10a   :  { %239 = shalt.err (!%p236_p4)
}
 0x10b   :  { %s240_s17 = scalar_lea.hbm %s336_s3, 256 }
 0x10c   :  { %p241_p5 = scmp.ne.s32.totalorder %s336_s3, %s240_s17  ;;  %p244_p6 = scmp.lt.u32.totalorder %s240_s17, %s336_s3 }
 0x10e   :  { %p246_p7 = pnand %p244_p6, %p241_p5 }
 0x110   :  { %249 = shalt.err (!%p246_p7)
}
 0x111   :  { %s254_s22 = smov 128   ;;  %s255_s23 = smov 8  }
 0x112   :  { %188 = dma.vmem_to_hbm [thread:$0]  %s183_s16, 256, %s336_s3, [#allocation3], %s254_s22, %s254_s22, %s255_s23  }
 0x113   :  { %250 = dma.done.wait [#allocation3], 256  }
 0x114   :  { %251 = vsyncadd [#allocation3], 4294967040 }
 0x115   :  { %192 = vsyncpa [#allocation3], 1 }

</bundles_post_ra>
